<compile_context>
chip_gen: v6e
topology: v6e:2x2x1
jax: 0.10.0
libtpu: 0.0.40
codegen_flags: <defaults>
</compile_context>

<pallas_src>
import jax
import jax.numpy as jnp
from jax.experimental import pallas as pl
from jax.experimental.pallas import tpu as pltpu

_LANE = 128


def _round_up(x, m):
    return (x + m - 1) // m * m


def _vmem_capacity_bytes():
    try:
        return int(pltpu.get_tpu_info().vmem_capacity_bytes)
    except Exception:
        return 64 << 20  # conservative default (v7x per-TensorCore VMEM)


def _slstm_kernel(x_ref, h_ref, c_ref, n_ref, wx_ref, wh_ref, b_ref,
                  h_out_ref, c_out_ref, n_out_ref):
    tn = c_out_ref.shape[1]
    cdt = wx_ref.dtype  # MXU operand dtype (bf16 by default); cast activations in VMEM.

    # Two accumulating MXU matmuls against the split weights; f32 accumulation.
    gates = (jnp.dot(x_ref[...].astype(cdt), wx_ref[...],
                     preferred_element_type=jnp.float32)
             + jnp.dot(h_ref[...].astype(cdt), wh_ref[...],
                       preferred_element_type=jnp.float32)
             + b_ref[...])

    # Lane-aligned gate slices for this hidden tile: [i | f | g | o].
    # TODO(synk): exp() is unstabilized (matches the reference); production xLSTM adds an m_t stabilizer.
    i_g = jnp.exp(gates[:, 0 * tn:1 * tn])
    f_g = jax.nn.sigmoid(gates[:, 1 * tn:2 * tn])
    g_g = jnp.tanh(gates[:, 2 * tn:3 * tn])
    o_g = jax.nn.sigmoid(gates[:, 3 * tn:4 * tn])

    c = c_ref[...].astype(jnp.float32)
    n = n_ref[...].astype(jnp.float32)

    n_new = f_g * n + i_g
    c_new = f_g * c + i_g * g_g
    # Approximate EUP reciprocal instead of an exact divide (fine for forward/inference).
    h_new = o_g * (c_new * pl.reciprocal(n_new + 1e-8, approx=True))

    h_out_ref[...] = h_new.astype(h_out_ref.dtype)
    c_out_ref[...] = c_new.astype(c_out_ref.dtype)
    n_out_ref[...] = n_new.astype(n_out_ref.dtype)


def prepare_slstm_params(w_ih, w_hh, bias, *, param_dtype=jnp.bfloat16, tile_n=None):
    """One-time parameter prep (hoisted off the per-step path).

    w_ih: (4H, I), w_hh: (4H, H), bias: (4H,)

    Returns:
      w_x    : (Ip, 4*Hp)  -- W_ih^T, hidden-tile-major columns [i_j|f_j|g_j|o_j]
      w_h    : (Hp, 4*Hp)  -- W_hh^T, same column layout
      bias2d : (1, 4*Hp)   -- f32 (negligible traffic; added in the f32 epilogue)
      dims   : (I, H, Ip, Hp, tile_n)
    """
    fourH, I = w_ih.shape
    H = fourH // 4
    assert w_ih.shape == (4 * H, I)
    assert w_hh.shape == (4 * H, H)
    assert bias.shape == (4 * H,)

    Ip = _round_up(I, _LANE)
    Hp = _round_up(H, _LANE)
    w_itemsize = jnp.dtype(param_dtype).itemsize

    if tile_n is None:
        # Largest tile width (multiple of 128 dividing Hp) whose [w_x | w_h] column block
        # fits in ~1/3 of per-core VMEM (leaves room for activations, gates, outputs).
        # tile_n == Hp keeps the whole weight VMEM-resident (single-buffered); smaller
        # tile_n streams hidden tiles (v7x 64 MiB VMEM / large H).
        budget = max(8 << 20, _vmem_capacity_bytes() // 3)
        tile_n = _LANE
        cand = _LANE
        while cand <= Hp:
            if Hp % cand == 0 and (Ip + Hp) * 4 * cand * w_itemsize <= budget:
                tile_n = cand
            cand += _LANE
    assert tile_n % _LANE == 0 and Hp % tile_n == 0
    nj = Hp // tile_n

    w_ih_t = jnp.transpose(w_ih).astype(param_dtype)   # (I, 4H)
    w_hh_t = jnp.transpose(w_hh).astype(param_dtype)   # (H, 4H)

    w_x = jnp.zeros((Ip, 4 * Hp), param_dtype)
    w_h = jnp.zeros((Hp, 4 * Hp), param_dtype)
    bias2d = jnp.zeros((1, 4 * Hp), jnp.float32)
    for j in range(nj):
        lo = j * tile_n
        hi = min(lo + tile_n, H)
        if hi <= lo:
            continue
        w = hi - lo
        for k in range(4):
            col = j * 4 * tile_n + k * tile_n
            w_x = w_x.at[:I, col:col + w].set(w_ih_t[:, k * H + lo:k * H + hi])
            w_h = w_h.at[:H, col:col + w].set(w_hh_t[:, k * H + lo:k * H + hi])
            bias2d = bias2d.at[:, col:col + w].set(
                bias[k * H + lo:k * H + hi].astype(jnp.float32))

    return w_x, w_h, bias2d, (I, H, Ip, Hp, tile_n)


def _pad2(a, rows, cols):
    r, c = a.shape
    if r == rows and c == cols:
        return a
    return jnp.pad(a, ((0, rows - r), (0, cols - c)))


def slstm_cell(x, h, c, n, w_x, w_h, bias2d, dims, *, block_b=None, interpret=False):
    """Pallas sLSTM cell forward (single step).

    x: (B, I); h, c, n: (B, H); params from prepare_slstm_params().
    Returns (h_new, c_new, n_new): h in x.dtype, c/n kept in float32.
    """
    I, H, Ip, Hp, tn = dims
    B = x.shape[0]
    assert x.shape == (B, I) and h.shape == (B, H)
    assert c.shape == (B, H) and n.shape == (B, H)
    assert w_x.shape == (Ip, 4 * Hp) and w_h.shape == (Hp, 4 * Hp)
    assert bias2d.shape == (1, 4 * Hp)
    nj = Hp // tn

    # Batch tiling: 256 fills the 256-wide MXUs of v6e/v7x; keep a multiple of 16 when
    # activations are bf16 (packed (16,128) tile minimum), 8 otherwise.
    sub = 16 if x.dtype == jnp.bfloat16 else 8
    if block_b is None:
        block_b = 256 if B >= 256 else 128
    block_b = max(sub, min(block_b, _round_up(B, sub)))
    block_b = _round_up(block_b, sub)
    Bp = _round_up(B, block_b)
    nb = Bp // block_b

    # Per-step glue: pad only (no [x | h] concat -> no extra HBM round trip of a fused buffer).
    x_p = _pad2(x, Bp, Ip)
    h_p = _pad2(h, Bp, Hp)
    c_p = _pad2(c.astype(jnp.float32), Bp, Hp)
    n_p = _pad2(n.astype(jnp.float32), Bp, Hp)

    w_itemsize = jnp.dtype(w_x.dtype).itemsize
    x_itemsize = jnp.dtype(x_p.dtype).itemsize
    h_itemsize = jnp.dtype(h_p.dtype).itemsize

    out_shapes = (
        jax.ShapeDtypeStruct((Bp, Hp), x.dtype),      # h
        jax.ShapeDtypeStruct((Bp, Hp), jnp.float32),  # c  (state kept in f32)
        jax.ShapeDtypeStruct((Bp, Hp), jnp.float32),  # n  (normalizer kept in f32)
    )

    # Single-buffer the grid-invariant weight/bias (halves their VMEM footprint); when the
    # weight is tiled over hidden (nj > 1) keep default double-buffering so the DMA of
    # tile j+1 overlaps the MXU + EUP work of tile j.
    w_mode = pl.Buffered(1) if nj == 1 else None

    def _spec(shape, imap, mode=None):
        if mode is None:
            return pl.BlockSpec(shape, imap)
        return pl.BlockSpec(shape, imap, pipeline_mode=mode)

    # Grid = (hidden tiles, batch blocks); hidden axis is OUTER so each weight tile is
    # fetched from HBM exactly once (weight-read-bound regime).
    in_specs = [
        _spec((block_b, Ip), lambda j, b: (b, 0)),            # x
        _spec((block_b, Hp), lambda j, b: (b, 0)),            # h
        _spec((block_b, tn), lambda j, b: (b, j)),            # c
        _spec((block_b, tn), lambda j, b: (b, j)),            # n
        _spec((Ip, 4 * tn), lambda j, b: (0, j), w_mode),     # w_x tile
        _spec((Hp, 4 * tn), lambda j, b: (0, j), w_mode),     # w_h tile
        _spec((1, 4 * tn), lambda j, b: (0, j), w_mode),      # bias tile
    ]
    out_specs = (
        pl.BlockSpec((block_b, tn), lambda j, b: (b, j)),
        pl.BlockSpec((block_b, tn), lambda j, b: (b, j)),
        pl.BlockSpec((block_b, tn), lambda j, b: (b, j)),
    )

    # Megacore: split hidden tiles across cores when tiled (disjoint weight reads per core);
    # only split batch when B is large enough to amortize duplicated weight fetches.
    if nj > 1:
        dim_sem = ("parallel", "arbitrary")
    elif nb > 1 and B >= 512:
        dim_sem = ("arbitrary", "parallel")
    else:
        dim_sem = ("arbitrary", "arbitrary")

    # Honest VMEM accounting: weight/bias (x n buffers), x/h blocks, c/n in, 3 outputs,
    # gates intermediate + activations, headroom for compiler scratch/semaphores.
    n_w_buf = 1 if nj == 1 else 2
    vmem_needed = (
        n_w_buf * ((Ip + Hp) * 4 * tn * w_itemsize + 4 * tn * 4)
        + 2 * block_b * (Ip * x_itemsize + Hp * h_itemsize)
        + 2 * 2 * block_b * tn * 4
        + 2 * block_b * tn * (x_itemsize + 4 + 4)
        + 2 * block_b * 4 * tn * 4
        + (4 << 20)
    )
    vmem_cap = _vmem_capacity_bytes()
    vmem_limit = int(min(max(vmem_needed, 16 << 20), (vmem_cap * 3) // 4))

    cost = pl.CostEstimate(
        flops=int(2 * Bp * (Ip + Hp) * 4 * Hp + 10 * Bp * Hp),
        transcendentals=int(5 * Bp * Hp),
        bytes_accessed=int((Ip + Hp) * 4 * Hp * w_itemsize + 4 * Hp * 4
                           + Bp * (Ip * x_itemsize + Hp * h_itemsize)
                           + 2 * Bp * Hp * 4
                           + Bp * Hp * (x_itemsize + 8)),
    )

    h_new, c_new, n_new = pl.pallas_call(
        _slstm_kernel,
        out_shape=out_shapes,
        grid=(nj, nb),
        in_specs=in_specs,
        out_specs=out_specs,
        compiler_params=pltpu.CompilerParams(
            dimension_semantics=dim_sem,
            vmem_limit_bytes=vmem_limit,
        ),
        cost_estimate=cost,
        interpret=interpret,
    )(x_p, h_p, c_p, n_p, w_x, w_h, bias2d)

    return h_new[:B, :H], c_new[:B, :H], n_new[:B, :H]


def _xavier_uniform(key, shape, dtype=jnp.float32):
    fan_out, fan_in = shape
    bound = (6.0 / (fan_in + fan_out)) ** 0.5
    return jax.random.uniform(key, shape, dtype, minval=-bound, maxval=bound)


def _reference(x, h, c, n, w_ih, w_hh, bias, compute_dtype=jnp.float32):
    cd = compute_dtype
    gates = (jnp.dot(x.astype(cd), w_ih.T.astype(cd),
                     preferred_element_type=jnp.float32,
                     precision=jax.lax.Precision.HIGHEST)
             + jnp.dot(h.astype(cd), w_hh.T.astype(cd),
                       preferred_element_type=jnp.float32,
                       precision=jax.lax.Precision.HIGHEST)
             + bias.astype(jnp.float32))
    H = h.shape[1]
    i, f, g, o = (gates[:, k * H:(k + 1) * H] for k in range(4))
    i = jnp.exp(i)
    f = jax.nn.sigmoid(f)
    g = jnp.tanh(g)
    o = jax.nn.sigmoid(o)
    n_new = f * n + i
    c_new = f * c + i * g
    h_new = o * (c_new / (n_new + 1e-8))
    return h_new, c_new, n_new


if __name__ == "__main__":
    key = jax.random.PRNGKey(0)

    # ---- Test 1: module-sized shapes, default bf16 fast path (single tile, single block).
    B, input_size, hidden_size = 8, 32, 32
    k_x, k_h, k_c, k_n, k_wih, k_whh, key = jax.random.split(key, 7)
    x = jax.random.normal(k_x, (B, input_size), jnp.float32)
    h = jax.random.normal(k_h, (B, hidden_size), jnp.float32)
    c = jax.random.normal(k_c, (B, hidden_size), jnp.float32)
    n = jnp.abs(jax.random.normal(k_n, (B, hidden_size), jnp.float32)) + 0.5
    w_ih = _xavier_uniform(k_wih, (4 * hidden_size, input_size))
    w_hh = _xavier_uniform(k_whh, (4 * hidden_size, hidden_size))
    bias = jnp.zeros((4 * hidden_size,), jnp.float32)  # matches reset_parameters()

    w_x, w_h, b2d, dims = prepare_slstm_params(w_ih, w_hh, bias)  # bf16 weights
    h1, c1, n1 = jax.block_until_ready(slstm_cell(x, h, c, n, w_x, w_h, b2d, dims))

    # Compare against a reference that also uses bf16 matmul operands (f32 accumulate):
    # remaining differences are reduction order, padding and the approx reciprocal on h.
    h_rb, c_rb, n_rb = _reference(x, h, c, n, w_ih, w_hh, bias, compute_dtype=jnp.bfloat16)
    assert jnp.allclose(c1, c_rb, atol=1e-3, rtol=1e-3)
    assert jnp.allclose(n1, n_rb, atol=1e-3, rtol=1e-3)
    assert jnp.allclose(h1, h_rb, atol=3e-3, rtol=3e-3)
    # Loose sanity check against the full-f32 reference (bf16 weight quantization drift only).
    h_rf, c_rf, n_rf = _reference(x, h, c, n, w_ih, w_hh, bias)
    assert jnp.allclose(c1, c_rf, atol=2e-1, rtol=1e-1)
    assert jnp.allclose(h1, h_rf, atol=2e-1, rtol=1e-1)

    # ---- Test 2: exercise the hidden-tile (nj=2) + batch-block (nb=3) grid, f32 params.
    B2, I2, H2 = 24, 96, 256
    k_x, k_h, k_c, k_n, k_wih, k_whh, k_b, key = jax.random.split(key, 8)
    x2 = jax.random.normal(k_x, (B2, I2), jnp.float32)
    h2 = jax.random.normal(k_h, (B2, H2), jnp.float32)
    c2 = jax.random.normal(k_c, (B2, H2), jnp.float32)
    n2 = jnp.abs(jax.random.normal(k_n, (B2, H2), jnp.float32)) + 0.5
    w_ih2 = _xavier_uniform(k_wih, (4 * H2, I2))
    w_hh2 = _xavier_uniform(k_whh, (4 * H2, H2))
    bias2 = 0.1 * jax.random.normal(k_b, (4 * H2,), jnp.float32)

    w_x2, w_h2, b2d2, dims2 = prepare_slstm_params(
        w_ih2, w_hh2, bias2, param_dtype=jnp.float32, tile_n=128)
    h2o, c2o, n2o = jax.block_until_ready(
        slstm_cell(x2, h2, c2, n2, w_x2, w_h2, b2d2, dims2, block_b=8))

    h2r, c2r, n2r = _reference(x2, h2, c2, n2, w_ih2, w_hh2, bias2)
    assert jnp.allclose(c2o, c2r, atol=1e-3, rtol=1e-3)
    assert jnp.allclose(n2o, n2r, atol=1e-3, rtol=1e-3)
    assert jnp.allclose(h2o, h2r, atol=3e-3, rtol=3e-3)

    print("KERNEL_OK")
</pallas_src>

<mosaic_0001>
module attributes {stable_mosaic.version = 11 : i64} {
  func.func @_slstm_kernel(%arg0: i32, %arg1: i32, %arg2: memref<8x128xf32, #tpu.memory_space<vmem>>, %arg3: memref<8x128xf32, #tpu.memory_space<vmem>>, %arg4: memref<8x128xf32, #tpu.memory_space<vmem>>, %arg5: memref<8x128xf32, #tpu.memory_space<vmem>>, %arg6: memref<128x512xbf16, #tpu.memory_space<vmem>>, %arg7: memref<128x512xbf16, #tpu.memory_space<vmem>>, %arg8: memref<1x512xf32, #tpu.memory_space<vmem>>, %arg9: memref<8x128xf32, #tpu.memory_space<vmem>>, %arg10: memref<8x128xf32, #tpu.memory_space<vmem>>, %arg11: memref<8x128xf32, #tpu.memory_space<vmem>>) attributes {dimension_semantics = [#tpu.dimension_semantics<arbitrary>, #tpu.dimension_semantics<arbitrary>], iteration_bounds = array<i64: 1, 1>, scalar_prefetch = 0 : i64, scratch_operands = 0 : i64, tpu.core_type = #tpu.core_type<tc>, window_params = [{transform_indices = @transform_0, window_bounds = array<i64: 8, 128>}, {transform_indices = @transform_1, window_bounds = array<i64: 8, 128>}, {transform_indices = @transform_2, window_bounds = array<i64: 8, 128>}, {transform_indices = @transform_3, window_bounds = array<i64: 8, 128>}, {pipeline_mode = #tpu.pipeline_mode<synchronous>, transform_indices = @transform_4, window_bounds = array<i64: 128, 512>}, {pipeline_mode = #tpu.pipeline_mode<synchronous>, transform_indices = @transform_5, window_bounds = array<i64: 128, 512>}, {pipeline_mode = #tpu.pipeline_mode<synchronous>, transform_indices = @transform_6, window_bounds = array<i64: 1, 512>}, {transform_indices = @transform_7, window_bounds = array<i64: 8, 128>}, {transform_indices = @transform_8, window_bounds = array<i64: 8, 128>}, {transform_indices = @transform_9, window_bounds = array<i64: 8, 128>}]} {
    %c0 = arith.constant 0 : index
    %c0_0 = arith.constant 0 : index
    %0 = vector.load %arg2[%c0, %c0_0] : memref<8x128xf32, #tpu.memory_space<vmem>>, vector<8x128xf32>
    %1 = arith.truncf %0 : vector<8x128xf32> to vector<8x128xbf16>
    %c0_1 = arith.constant 0 : index
    %c0_2 = arith.constant 0 : index
    %2 = vector.load %arg6[%c0_1, %c0_2] : memref<128x512xbf16, #tpu.memory_space<vmem>>, vector<128x512xbf16>
    %cst = arith.constant dense<0.000000e+00> : vector<8x512xf32>
    %3 = tpu.matmul %1, %2, %cst {dimension_numbers = #tpu.dot_dimension_numbers<[1], [0], [0], [1], [0, 0, 1, 1], [], []>} : vector<8x128xbf16>, vector<128x512xbf16>, vector<8x512xf32> -> vector<8x512xf32>
    %c0_3 = arith.constant 0 : index
    %c0_4 = arith.constant 0 : index
    %4 = vector.load %arg3[%c0_3, %c0_4] : memref<8x128xf32, #tpu.memory_space<vmem>>, vector<8x128xf32>
    %5 = arith.truncf %4 : vector<8x128xf32> to vector<8x128xbf16>
    %c0_5 = arith.constant 0 : index
    %c0_6 = arith.constant 0 : index
    %6 = vector.load %arg7[%c0_5, %c0_6] : memref<128x512xbf16, #tpu.memory_space<vmem>>, vector<128x512xbf16>
    %cst_7 = arith.constant dense<0.000000e+00> : vector<8x512xf32>
    %7 = tpu.matmul %5, %6, %cst_7 {dimension_numbers = #tpu.dot_dimension_numbers<[1], [0], [0], [1], [0, 0, 1, 1], [], []>} : vector<8x128xbf16>, vector<128x512xbf16>, vector<8x512xf32> -> vector<8x512xf32>
    %8 = arith.addf %3, %7 : vector<8x512xf32>
    %c0_8 = arith.constant 0 : index
    %c0_9 = arith.constant 0 : index
    %9 = vector.load %arg8[%c0_8, %c0_9] : memref<1x512xf32, #tpu.memory_space<vmem>>, vector<1x512xf32>
    %10 = vector.broadcast %9 : vector<1x512xf32> to vector<8x512xf32>
    %11 = arith.addf %8, %10 : vector<8x512xf32>
    %12 = vector.extract_strided_slice %11 {offsets = [0, 0], sizes = [8, 128], strides = [1, 1]} : vector<8x512xf32> to vector<8x128xf32>
    %13 = math.exp %12 : vector<8x128xf32>
    %14 = vector.extract_strided_slice %11 {offsets = [0, 128], sizes = [8, 128], strides = [1, 1]} : vector<8x512xf32> to vector<8x128xf32>
    %15 = arith.negf %14 : vector<8x128xf32>
    %16 = math.exp %15 : vector<8x128xf32>
    %cst_10 = arith.constant 1.000000e+00 : f32
    %17 = vector.broadcast %cst_10 : f32 to vector<8x128xf32>
    %18 = arith.addf %17, %16 : vector<8x128xf32>
    %19 = arith.divf %17, %18 : vector<8x128xf32>
    %20 = vector.extract_strided_slice %11 {offsets = [0, 256], sizes = [8, 128], strides = [1, 1]} : vector<8x512xf32> to vector<8x128xf32>
    %21 = math.tanh %20 : vector<8x128xf32>
    %22 = vector.extract_strided_slice %11 {offsets = [0, 384], sizes = [8, 128], strides = [1, 1]} : vector<8x512xf32> to vector<8x128xf32>
    %23 = arith.negf %22 : vector<8x128xf32>
    %24 = math.exp %23 : vector<8x128xf32>
    %cst_11 = arith.constant 1.000000e+00 : f32
    %25 = vector.broadcast %cst_11 : f32 to vector<8x128xf32>
    %26 = arith.addf %25, %24 : vector<8x128xf32>
    %27 = arith.divf %25, %26 : vector<8x128xf32>
    %c0_12 = arith.constant 0 : index
    %c0_13 = arith.constant 0 : index
    %28 = vector.load %arg4[%c0_12, %c0_13] : memref<8x128xf32, #tpu.memory_space<vmem>>, vector<8x128xf32>
    %c0_14 = arith.constant 0 : index
    %c0_15 = arith.constant 0 : index
    %29 = vector.load %arg5[%c0_14, %c0_15] : memref<8x128xf32, #tpu.memory_space<vmem>>, vector<8x128xf32>
    %30 = arith.mulf %19, %29 : vector<8x128xf32>
    %31 = arith.addf %30, %13 : vector<8x128xf32>
    %32 = arith.mulf %19, %28 : vector<8x128xf32>
    %33 = arith.mulf %13, %21 : vector<8x128xf32>
    %34 = arith.addf %32, %33 : vector<8x128xf32>
    %cst_16 = arith.constant 9.99999993E-9 : f32
    %35 = vector.broadcast %cst_16 : f32 to vector<8x128xf32>
    %36 = arith.addf %31, %35 : vector<8x128xf32>
    %37 = tpu.reciprocal %36 {approx = true} : vector<8x128xf32> -> vector<8x128xf32>
    %38 = arith.mulf %34, %37 : vector<8x128xf32>
    %39 = arith.mulf %27, %38 : vector<8x128xf32>
    %c0_17 = arith.constant 0 : index
    %c0_18 = arith.constant 0 : index
    %40 = vector.load %arg9[%c0_17, %c0_18] : memref<8x128xf32, #tpu.memory_space<vmem>>, vector<8x128xf32>
    tpu.vector_store %arg9[%c0_17, %c0_18], %39 {strides = array<i32>} : memref<8x128xf32, #tpu.memory_space<vmem>>, vector<8x128xf32>,
    %c0_19 = arith.constant 0 : index
    %c0_20 = arith.constant 0 : index
    %41 = vector.load %arg10[%c0_19, %c0_20] : memref<8x128xf32, #tpu.memory_space<vmem>>, vector<8x128xf32>
    tpu.vector_store %arg10[%c0_19, %c0_20], %34 {strides = array<i32>} : memref<8x128xf32, #tpu.memory_space<vmem>>, vector<8x128xf32>,
    %c0_21 = arith.constant 0 : index
    %c0_22 = arith.constant 0 : index
    %42 = vector.load %arg11[%c0_21, %c0_22] : memref<8x128xf32, #tpu.memory_space<vmem>>, vector<8x128xf32>
    tpu.vector_store %arg11[%c0_21, %c0_22], %31 {strides = array<i32>} : memref<8x128xf32, #tpu.memory_space<vmem>>, vector<8x128xf32>,
    return
  }
  func.func @transform_0(%arg0: i32, %arg1: i32) -> (i32, i32) {
    %c0_i32 = arith.constant 0 : i32
    %c0_i32_0 = arith.constant 0 : i32
    return %arg1, %c0_i32 : i32, i32
  }
  func.func @transform_1(%arg0: i32, %arg1: i32) -> (i32, i32) {
    %c0_i32 = arith.constant 0 : i32
    %c0_i32_0 = arith.constant 0 : i32
    return %arg1, %c0_i32 : i32, i32
  }
  func.func @transform_2(%arg0: i32, %arg1: i32) -> (i32, i32) {
    %c0_i32 = arith.constant 0 : i32
    return %arg1, %arg0 : i32, i32
  }
  func.func @transform_3(%arg0: i32, %arg1: i32) -> (i32, i32) {
    %c0_i32 = arith.constant 0 : i32
    return %arg1, %arg0 : i32, i32
  }
  func.func @transform_4(%arg0: i32, %arg1: i32) -> (i32, i32) {
    %c0_i32 = arith.constant 0 : i32
    %c0_i32_0 = arith.constant 0 : i32
    return %c0_i32, %arg0 : i32, i32
  }
  func.func @transform_5(%arg0: i32, %arg1: i32) -> (i32, i32) {
    %c0_i32 = arith.constant 0 : i32
    %c0_i32_0 = arith.constant 0 : i32
    return %c0_i32, %arg0 : i32, i32
  }
  func.func @transform_6(%arg0: i32, %arg1: i32) -> (i32, i32) {
    %c0_i32 = arith.constant 0 : i32
    %c0_i32_0 = arith.constant 0 : i32
    return %c0_i32, %arg0 : i32, i32
  }
  func.func @transform_7(%arg0: i32, %arg1: i32) -> (i32, i32) {
    %c0_i32 = arith.constant 0 : i32
    return %arg1, %arg0 : i32, i32
  }
  func.func @transform_8(%arg0: i32, %arg1: i32) -> (i32, i32) {
    %c0_i32 = arith.constant 0 : i32
    return %arg1, %arg0 : i32, i32
  }
  func.func @transform_9(%arg0: i32, %arg1: i32) -> (i32, i32) {
    %c0_i32 = arith.constant 0 : i32
    return %arg1, %arg0 : i32, i32
  }
}

</mosaic_0001>

<bundles_post_ra>
// kernel: tpu_custom_call.1
= control target key start
LH: loop header
LB: loop body
LE: loop exit
PB: predicated region body
PF: predicated region fallthrough
CT: control target
= control target key end

     0   :  { %15 = vsyncpa [#allocation3], 0  ;;  %s1234_s0 = inlined_call_operand.hbm [shape: f32[8,128], index: 0, kind: input, shape index: {}]   ;;  %s1235_s1 = inlined_call_operand.hbm [shape: f32[8,128], index: 1, kind: input, shape index: {}]   ;;  %s1236_s2 = inlined_call_operand.hbm [shape: f32[8,128], index: 2, kind: input, shape index: {}]   ;;  %s1237_s3 = inlined_call_operand.hbm [shape: f32[8,128], index: 3, kind: input, shape index: {}]   ;;  %s1238_s4 = inlined_call_operand.hbm [shape: bf16[128,512], index: 4, kind: input, shape index: {}]   ;;  %s1239_s5 = inlined_call_operand.hbm [shape: bf16[128,512], index: 5, kind: input, shape index: {}]   ;;  %s1240_s6 = inlined_call_operand.vmem [shape: f32[1,512], index: 6, kind: input, shape index: {}]   ;;  %s1241_s7 = inlined_call_operand.hbm [shape: f32[8,128], index: 7, kind: output, shape index: {0}]   ;;  %s1242_s8 = inlined_call_operand.hbm [shape: f32[8,128], index: 8, kind: output, shape index: {1}]   ;;  %s1243_s9 = inlined_call_operand.hbm [shape: f32[8,128], index: 9, kind: output, shape index: {2}]  }
   0x1   :  { %16 = vsyncpa [#allocation6], 0 }
   0x2   :  { %17 = vsyncpa [#allocation9], 0 }
   0x3   :  { %18 = vsyncpa [#allocation12], 0 }
   0x4   :  { %19 = vsyncpa [#allocation4], 0 }
   0x5   :  { %20 = vsyncpa [#allocation15], 0  ;;  %s1138_s30 = smov [#allocation5]   ;;  %s1139_s11 = smov [#allocation8]  }
   0x6   :  { %s37_s10 = sshll.u32 %s1138_s30, 4  ;;  %s57_s12 = sshll.u32 %s1139_s11, 4  ;;  %s38_s10 = int_to_ptr.vmem [resolvable:$true] %s37_s10  ;;  %s58_s12 = int_to_ptr.vmem [resolvable:$true] %s57_s12 }
   0x7   :  { %s954_s13 = scalar_lea.vmem %s38_s10, 128  ;;  %p959_p1 = scmp.lt.s32.totalorder %s38_s10, %s38_s10 }
   0x8   :  { %p955_p0 = scmp.ne.s32.totalorder %s38_s10, %s954_s13  ;;  %p960_p2 = scmp.lt.s32.totalorder %s954_s13, %s954_s13 }
   0xa   :  { %p961_p3 = por %p960_p2, %p959_p1 }
   0xc   :  { %p962_p4 = pnand %p961_p3, %p955_p0 }
   0xe   :  { %965 = shalt.err (!%p962_p4)
}
   0xf   :  { %40 = dma.hbm_to_vmem [thread:$0]  %s1235_s1, 128, %s38_s10, [#allocation6]  }
  0x10   :  { %s974_s16 = scalar_lea.vmem %s58_s12, 128  ;;  %p979_p6 = scmp.lt.s32.totalorder %s58_s12, %s58_s12 }
  0x11   :  { %p975_p5 = scmp.ne.s32.totalorder %s58_s12, %s974_s16  ;;  %p980_p7 = scmp.lt.s32.totalorder %s974_s16, %s974_s16 }
  0x13   :  { %p981_p8 = por %p980_p7, %p979_p6 }
  0x15   :  { %p982_p9 = pnand %p981_p8, %p975_p5 }
  0x17   :  { %985 = shalt.err (!%p982_p9)
}
  0x18   :  { %60 = dma.hbm_to_vmem [thread:$0]  %s1237_s3, 128, %s58_s12, [#allocation9]  }
  0x19   :  { %s1140_s19 = smov [#allocation2]   ;;  %s1141_s21 = smov [#allocation7]  }
  0x1a   :  { %s27_s20 = sshll.u32 %s1140_s19, 4  ;;  %s47_s22 = sshll.u32 %s1141_s21, 4  ;;  %s28_s20 = int_to_ptr.vmem [resolvable:$true] %s27_s20  ;;  %s48_s22 = int_to_ptr.vmem [resolvable:$true] %s47_s22 }
  0x1b   :  { %s994_s23 = scalar_lea.vmem %s28_s20, 128  ;;  %p999_p11 = scmp.lt.s32.totalorder %s28_s20, %s28_s20 }
  0x1c   :  { %p995_p10 = scmp.ne.s32.totalorder %s28_s20, %s994_s23  ;;  %p1000_p12 = scmp.lt.s32.totalorder %s994_s23, %s994_s23 }
  0x1e   :  { %p1001_p13 = por %p1000_p12, %p999_p11 }
  0x20   :  { %p1002_p0 = pnand %p1001_p13, %p995_p10 }
  0x22   :  { %1005 = shalt.err (!%p1002_p0)
}
  0x23   :  { %30 = dma.hbm_to_vmem [thread:$0]  %s1234_s0, 128, %s28_s20, [#allocation3]  }
  0x24   :  { %s1014_s25 = scalar_lea.vmem %s48_s22, 128  ;;  %p1019_p2 = scmp.lt.s32.totalorder %s48_s22, %s48_s22 }
  0x25   :  { %p1015_p1 = scmp.ne.s32.totalorder %s48_s22, %s1014_s25  ;;  %p1020_p3 = scmp.lt.s32.totalorder %s1014_s25, %s1014_s25 }
  0x27   :  { %p1021_p4 = por %p1020_p3, %p1019_p2 }
  0x29   :  { %p1022_p5 = pnand %p1021_p4, %p1015_p1 }
  0x2b   :  { %1025 = shalt.err (!%p1022_p5)
}
  0x2c   :  { %50 = dma.hbm_to_vmem [thread:$0]  %s1236_s2, 128, %s48_s22, [#allocation6]  }
  0x2d   :  { %s1142_s27 = smov [#allocation10]  }
  0x2e   :  { %s66_s28 = sshll.u32 %s1142_s27, 4  ;;  %s67_s28 = int_to_ptr.vmem [resolvable:$true] %s66_s28 }
  0x2f   :  { %s1034_s29 = scalar_lea.vmem %s67_s28, 4096  ;;  %p1039_p7 = scmp.lt.s32.totalorder %s67_s28, %s67_s28 }
  0x30   :  { %p1035_p6 = scmp.ne.s32.totalorder %s67_s28, %s1034_s29  ;;  %p1040_p8 = scmp.lt.s32.totalorder %s1034_s29, %s1034_s29 }
  0x32   :  { %p1041_p9 = por %p1040_p8, %p1039_p7 }
  0x34   :  { %p1042_p10 = pnand %p1041_p9, %p1035_p6 }
  0x36   :  { %1045 = shalt.err (!%p1042_p10)
}
  0x37   :  { %s1143_s0 = smov 256   ;;  %s1144_s30 = smov 16  }
  0x38   :  { %72 = dma.hbm_to_vmem [thread:$0]  %s1238_s4, 4096, %s67_s28, [#allocation9], %s1143_s0, %s1143_s0, %s1144_s30  }
  0x39   :  { %s1145_s12 = smov [#allocation11]  }
  0x3a   :  { %s78_s13 = sshll.u32 %s1145_s12, 4  ;;  %s79_s13 = int_to_ptr.vmem [resolvable:$true] %s78_s13 }
  0x3b   :  { %s1054_s2 = scalar_lea.vmem %s79_s13, 4096  ;;  %p1059_p12 = scmp.lt.s32.totalorder %s79_s13, %s79_s13 }
  0x3c   :  { %p1055_p11 = scmp.ne.s32.totalorder %s79_s13, %s1054_s2  ;;  %p1060_p13 = scmp.lt.s32.totalorder %s1054_s2, %s1054_s2 }
  0x3e   :  { %p1061_p0 = por %p1060_p13, %p1059_p12 }
  0x40   :  { %p1062_p1 = pnand %p1061_p0, %p1055_p11 }
  0x42   :  { %1065 = shalt.err (!%p1062_p1)
}
  0x43   :  { %84 = dma.hbm_to_vmem [thread:$0]  %s1239_s5, 4096, %s79_s13, [#allocation12], %s1143_s0, %s1143_s0, %s1144_s30  }
  0x44   :  { %1126 = dma.done.wait [#allocation3], 128  }
  0x45   :  { %1127 = vsyncadd [#allocation3], 4294967168 }
  0x46   :  { %1128 = dma.done.wait [#allocation6], 256  }
  0x47   :  { %1129 = vsyncadd [#allocation6], 4294967040 }
  0x48   :  { %1130 = dma.done.wait [#allocation9], 4224  }
  0x49   :  { %1131 = vsyncadd [#allocation9], 4294963072 }
  0x4a   :  { %1132 = dma.done.wait [#allocation12], 4096  }
  0x4b   :  { %1133 = vsyncadd [#allocation12], 4294963200  ;;  %v1146_v0 = vmov 0   ;;  %v836_v1 = vld [vmem:[#allocation11 + $0xe4] ss:$16 sps:$4 sm:$0xff]   ;;  %v140_v33 = vld [vmem:[#allocation5] sm:$0xff] }
  0x4c   :  { %366 = vmatprep.mubr.bf16.mxu0 %v1146_v0  ;;  %407 = vmatprep.mubr.bf16.mxu1 %v1146_v0  ;;  %v838_v2 = vld [vmem:[#allocation11 + $0xec] ss:$16 sps:$4 sm:$0xff]   ;;  %v840_v3 = vld [vmem:[#allocation11 + $0xe0] ss:$16 sps:$4 sm:$0xff]   ;;  %v841_v4 = vld [vmem:[#allocation11 + $0xe8] ss:$16 sps:$4 sm:$0xff]   ;;  %v141_v36 = vpack.c.bf16 %v140_v33, %v140_v33 }
  0x4d   :  { %334 = vmatprep.subr.bf16.mxu0 %v836_v1  ;;  %375 = vmatprep.subr.bf16.mxu1 %v838_v2  ;;  %v842_v5 = vld [vmem:[#allocation11 + $0xc4] ss:$16 sps:$4 sm:$0xff]   ;;  %v844_v6 = vld [vmem:[#allocation11 + $0xcc] ss:$16 sps:$4 sm:$0xff]   ;;  %v846_v7 = vld [vmem:[#allocation11 + $0xc0] ss:$16 sps:$4 sm:$0xff]  }
  0x4e   :  { %335 = vmatpush1.bf16.msra.mxu0 %v840_v3  ;;  %376 = vmatpush1.bf16.msra.mxu1 %v841_v4  ;;  %v847_v8 = vld [vmem:[#allocation11 + $0xc8] ss:$16 sps:$4 sm:$0xff]   ;;  %v848_v9 = vld [vmem:[#allocation11 + $0xa4] ss:$16 sps:$4 sm:$0xff]   ;;  %v850_v10 = vld [vmem:[#allocation11 + $0xac] ss:$16 sps:$4 sm:$0xff]  }
  0x4f   :  { %336 = vmatprep.subr.bf16.mxu0 %v842_v5  ;;  %377 = vmatprep.subr.bf16.mxu1 %v844_v6  ;;  %v852_v11 = vld [vmem:[#allocation11 + $0xa0] ss:$16 sps:$4 sm:$0xff]   ;;  %v853_v12 = vld [vmem:[#allocation11 + $0xa8] ss:$16 sps:$4 sm:$0xff]   ;;  %v854_v13 = vld [vmem:[#allocation11 + $0x84] ss:$16 sps:$4 sm:$0xff]  }
  0x50   :  { %v856_v14 = vld [vmem:[#allocation11 + $0x8c] ss:$16 sps:$4 sm:$0xff]   ;;  %v858_v15 = vld [vmem:[#allocation11 + $0x80] ss:$16 sps:$4 sm:$0xff]   ;;  %v859_v16 = vld [vmem:[#allocation11 + $0x88] ss:$16 sps:$4 sm:$0xff]  }
  0x51   :  { %v860_v17 = vld [vmem:[#allocation11 + $0x64] ss:$16 sps:$4 sm:$0xff]   ;;  %v862_v18 = vld [vmem:[#allocation11 + $0x6c] ss:$16 sps:$4 sm:$0xff]   ;;  %v864_v19 = vld [vmem:[#allocation11 + $0x60] ss:$16 sps:$4 sm:$0xff]  }
  0x52   :  { %337 = vmatpush1.bf16.msra.mxu0 %v846_v7  ;;  %378 = vmatpush1.bf16.msra.mxu1 %v847_v8  ;;  %v865_v20 = vld [vmem:[#allocation11 + $0x68] ss:$16 sps:$4 sm:$0xff]   ;;  %v866_v21 = vld [vmem:[#allocation11 + $0x44] ss:$16 sps:$4 sm:$0xff]   ;;  %v868_v22 = vld [vmem:[#allocation11 + $0x4c] ss:$16 sps:$4 sm:$0xff]  }
  0x53   :  { %338 = vmatprep.subr.bf16.mxu0 %v848_v9  ;;  %379 = vmatprep.subr.bf16.mxu1 %v850_v10  ;;  %v870_v23 = vld [vmem:[#allocation11 + $0x40] ss:$16 sps:$4 sm:$0xff]   ;;  %v871_v24 = vld [vmem:[#allocation11 + $0x48] ss:$16 sps:$4 sm:$0xff]   ;;  %v872_v25 = vld [vmem:[#allocation11 + $0x24] ss:$16 sps:$4 sm:$0xff]  }
  0x54   :  { %v874_v26 = vld [vmem:[#allocation11 + $0x2c] ss:$16 sps:$4 sm:$0xff]   ;;  %v876_v27 = vld [vmem:[#allocation11 + $0x20] ss:$16 sps:$4 sm:$0xff]   ;;  %v877_v28 = vld [vmem:[#allocation11 + $0x28] ss:$16 sps:$4 sm:$0xff]  }
  0x55   :  { %v878_v29 = vld [vmem:[#allocation11 + $0x4] ss:$16 sps:$4 sm:$0xff]   ;;  %v880_v30 = vld [vmem:[#allocation11 + $0xc] ss:$16 sps:$4 sm:$0xff]   ;;  %v882_v31 = vld [vmem:[#allocation11] ss:$16 sps:$4 sm:$0xff]  }
  0x56   :  { %339 = vmatpush1.bf16.msra.mxu0 %v852_v11  ;;  %380 = vmatpush1.bf16.msra.mxu1 %v853_v12  ;;  %v883_v32 = vld [vmem:[#allocation11 + $0x8] ss:$16 sps:$4 sm:$0xff]   ;;  %v886_v34 = vld [vmem:[#allocation10 + $0xe4] ss:$16 sps:$4 sm:$0xff]   ;;  %v889_v35 = vld [vmem:[#allocation10 + $0xec] ss:$16 sps:$4 sm:$0xff]  }
  0x57   :  { %340 = vmatprep.subr.bf16.mxu0 %v854_v13  ;;  %381 = vmatprep.subr.bf16.mxu1 %v856_v14  ;;  %v884_v37 = vld [vmem:[#allocation10 + $0xe0] ss:$16 sps:$4 sm:$0xff]   ;;  %v887_v38 = vld [vmem:[#allocation10 + $0xe8] ss:$16 sps:$4 sm:$0xff]   ;;  %v892_v39 = vld [vmem:[#allocation10 + $0xc4] ss:$16 sps:$4 sm:$0xff]   ;;  %v660_v13 = vlaneseq }
  0x58   :  { %v895_v40 = vld [vmem:[#allocation10 + $0xcc] ss:$16 sps:$4 sm:$0xff]   ;;  %v890_v41 = vld [vmem:[#allocation10 + $0xc0] ss:$16 sps:$4 sm:$0xff]   ;;  %v893_v42 = vld [vmem:[#allocation10 + $0xc8] ss:$16 sps:$4 sm:$0xff]  }
  0x59   :  { %v898_v43 = vld [vmem:[#allocation10 + $0xa4] ss:$16 sps:$4 sm:$0xff]   ;;  %v901_v44 = vld [vmem:[#allocation10 + $0xac] ss:$16 sps:$4 sm:$0xff]   ;;  %v896_v45 = vld [vmem:[#allocation10 + $0xa0] ss:$16 sps:$4 sm:$0xff]  }
  0x5a   :  { %341 = vmatpush1.bf16.msra.mxu0 %v858_v15  ;;  %382 = vmatpush1.bf16.msra.mxu1 %v859_v16  ;;  %v899_v46 = vld [vmem:[#allocation10 + $0xa8] ss:$16 sps:$4 sm:$0xff]   ;;  %v904_v47 = vld [vmem:[#allocation10 + $0x84] ss:$16 sps:$4 sm:$0xff]   ;;  %v907_v48 = vld [vmem:[#allocation10 + $0x8c] ss:$16 sps:$4 sm:$0xff]  }
  0x5b   :  { %342 = vmatprep.subr.bf16.mxu0 %v860_v17  ;;  %383 = vmatprep.subr.bf16.mxu1 %v862_v18  ;;  %v902_v49 = vld [vmem:[#allocation10 + $0x80] ss:$16 sps:$4 sm:$0xff]   ;;  %v905_v50 = vld [vmem:[#allocation10 + $0x88] ss:$16 sps:$4 sm:$0xff]   ;;  %v910_v51 = vld [vmem:[#allocation10 + $0x64] ss:$16 sps:$4 sm:$0xff]  }
  0x5c   :  { %v913_v52 = vld [vmem:[#allocation10 + $0x6c] ss:$16 sps:$4 sm:$0xff]   ;;  %v908_v53 = vld [vmem:[#allocation10 + $0x60] ss:$16 sps:$4 sm:$0xff]   ;;  %v911_v54 = vld [vmem:[#allocation10 + $0x68] ss:$16 sps:$4 sm:$0xff]  }
  0x5d   :  { %v916_v55 = vld [vmem:[#allocation10 + $0x44] ss:$16 sps:$4 sm:$0xff]   ;;  %v919_v56 = vld [vmem:[#allocation10 + $0x4c] ss:$16 sps:$4 sm:$0xff]   ;;  %v914_v57 = vld [vmem:[#allocation10 + $0x40] ss:$16 sps:$4 sm:$0xff]  }
  0x5e   :  { %343 = vmatpush1.bf16.msra.mxu0 %v864_v19  ;;  %384 = vmatpush1.bf16.msra.mxu1 %v865_v20  ;;  %v917_v58 = vld [vmem:[#allocation10 + $0x48] ss:$16 sps:$4 sm:$0xff]   ;;  %v922_v59 = vld [vmem:[#allocation10 + $0x24] ss:$16 sps:$4 sm:$0xff]   ;;  %v925_v60 = vld [vmem:[#allocation10 + $0x2c] ss:$16 sps:$4 sm:$0xff]  }
  0x5f   :  { %344 = vmatprep.subr.bf16.mxu0 %v866_v21  ;;  %385 = vmatprep.subr.bf16.mxu1 %v868_v22  ;;  %v920_v61 = vld [vmem:[#allocation10 + $0x20] ss:$16 sps:$4 sm:$0xff]   ;;  %v923_v62 = vld [vmem:[#allocation10 + $0x28] ss:$16 sps:$4 sm:$0xff]   ;;  %v928_v63 = vld [vmem:[#allocation10 + $0x4] ss:$16 sps:$4 sm:$0xff]  }
  0x60   :  { %v926_v1 = vld [vmem:[#allocation10] ss:$16 sps:$4 sm:$0xff]   ;;  %v929_v2 = vld [vmem:[#allocation10 + $0x8] ss:$16 sps:$4 sm:$0xff]   ;;  %v661_v14 = vshrl.u32 %v660_v13, 7  ;;  %s1148_s17 = smov [#allocation16]  }
  0x61   :  { %v106_v3 = vld [vmem:[#allocation2] sm:$0xff]  ;;  %s739_s18 = sshll.u32 %s1148_s17, 4  ;;  %s740_s18 = int_to_ptr.vmem [resolvable:$true] %s739_s18 }
  0x62   :  { %345 = vmatpush1.bf16.msra.mxu0 %v870_v23  ;;  %386 = vmatpush1.bf16.msra.mxu1 %v871_v24  ;;  %v107_v4 = vpack.c.bf16 %v106_v3, %v106_v3  ;;  %v666_v15 = vsub.s32 1, %v661_v14  ;;  %v658_v17 = vld [vmem:[%s1240_s6] sm:$0xf]  ;;  %v670_v33 = vsub.s32 2, %v661_v14  ;;  %s1147_s6 = smov [#allocation14]  }
  0x63   :  { %346 = vmatprep.subr.bf16.mxu0 %v872_v25  ;;  %387 = vmatprep.subr.bf16.mxu1 %v874_v26  ;;  %s729_s16 = sshll.u32 %s1147_s6, 4  ;;  %s730_s16 = int_to_ptr.vmem [resolvable:$true] %s729_s16 }
  0x64   :  { %v667_v19 = vrot.slane %v658_v17, %v666_v15  ;;  %s1066_s19 = scalar_lea.vmem %s730_s16, 128  ;;  %p1071_p3 = scmp.lt.s32.totalorder %s730_s16, %s730_s16 }
  0x65   :  { %p1067_p2 = scmp.ne.s32.totalorder %s730_s16, %s1066_s19  ;;  %p1072_p4 = scmp.lt.s32.totalorder %s1066_s19, %s1066_s19 }
  0x66   :  { %347 = vmatpush1.bf16.msra.mxu0 %v876_v27  ;;  %388 = vmatpush1.bf16.msra.mxu1 %v877_v28  ;;  %v662_v28 = vsub.s32 0, %v661_v14 }
  0x67   :  { %348 = vmatprep.subr.bf16.mxu0 %v878_v29  ;;  %389 = vmatprep.subr.bf16.mxu1 %v880_v30  ;;  %p1073_p5 = por %p1072_p4, %p1071_p3 }
  0x69   :  { %p1074_p6 = pnand %p1073_p5, %p1067_p2 }
  0x6a   :  { %349 = vmatpush1.bf16.msra.mxu0 %v882_v31  ;;  %390 = vmatpush1.bf16.msra.mxu1 %v883_v32  ;;  %v663_v31 = vrot.slane %v658_v17, %v662_v28  ;;  %v674_v32 = vsub.s32 3, %v661_v14 }
  0x6b   :  { %576 = vmatprep.subr.bf16.mxu0 %v886_v34  ;;  %617 = vmatprep.subr.bf16.mxu1 %v889_v35 }
  0x6d   :  { %367 = vmatmul.mubr.bf16.vlgmr.msra.gmra.mxu0 %v141_v36  ;;  %408 = vmatmul.mubr.bf16.vlgmr.msra.gmra.mxu1 %v141_v36  ;;  %v675_v36 = vrot.slane %v658_v17, %v674_v32 }
  0x6e   :  { %577 = vmatpush1.bf16.msra.mxu0 %v884_v37  ;;  %618 = vmatpush1.bf16.msra.mxu1 %v887_v38  ;;  %v671_v38 = vrot.slane %v658_v17, %v670_v33 }
  0x6f   :  { %578 = vmatprep.subr.bf16.mxu0 %v892_v39  ;;  %619 = vmatprep.subr.bf16.mxu1 %v895_v40 }
  0x70   :  { %608 = vmatprep.mubr.bf16.mxu0 %v1146_v0  ;;  %649 = vmatprep.mubr.bf16.mxu1 %v1146_v0  ;;  %v931_v0 = vld [vmem:[#allocation10 + $0xc] ss:$16 sps:$4 sm:$0xff]  }
  0x72   :  { %579 = vmatpush1.bf16.msra.mxu0 %v890_v41  ;;  %620 = vmatpush1.bf16.msra.mxu1 %v893_v42 }
  0x73   :  { %580 = vmatprep.subr.bf16.mxu0 %v898_v43  ;;  %621 = vmatprep.subr.bf16.mxu1 %v901_v44 }
  0x76   :  { %581 = vmatpush1.bf16.msra.mxu0 %v896_v45  ;;  %622 = vmatpush1.bf16.msra.mxu1 %v899_v46  ;;  %v700_v46 = vld [vmem:[#allocation8] sm:$0xff] }
  0x77   :  { %582 = vmatprep.subr.bf16.mxu0 %v904_v47  ;;  %623 = vmatprep.subr.bf16.mxu1 %v907_v48  ;;  %v699_v47 = vld [vmem:[#allocation7] sm:$0xff] }
  0x7a   :  { %583 = vmatpush1.bf16.msra.mxu0 %v902_v49  ;;  %624 = vmatpush1.bf16.msra.mxu1 %v905_v50 }
  0x7b   :  { %584 = vmatprep.subr.bf16.mxu0 %v910_v51  ;;  %625 = vmatprep.subr.bf16.mxu1 %v913_v52 }
  0x7e   :  { %585 = vmatpush1.bf16.msra.mxu0 %v908_v53  ;;  %626 = vmatpush1.bf16.msra.mxu1 %v911_v54 }
  0x7f   :  { %586 = vmatprep.subr.bf16.mxu0 %v916_v55  ;;  %627 = vmatprep.subr.bf16.mxu1 %v919_v56 }
  0x82   :  { %587 = vmatpush1.bf16.msra.mxu0 %v914_v57  ;;  %628 = vmatpush1.bf16.msra.mxu1 %v917_v58 }
  0x83   :  { %588 = vmatprep.subr.bf16.mxu0 %v922_v59  ;;  %629 = vmatprep.subr.bf16.mxu1 %v925_v60 }
  0x86   :  { %589 = vmatpush1.bf16.msra.mxu0 %v920_v61  ;;  %630 = vmatpush1.bf16.msra.mxu1 %v923_v62 }
  0x87   :  { %590 = vmatprep.subr.bf16.mxu0 %v928_v63  ;;  %631 = vmatprep.subr.bf16.mxu1 %v931_v0 }
  0x8a   :  { %591 = vmatpush1.bf16.msra.mxu0 %v926_v1  ;;  %632 = vmatpush1.bf16.msra.mxu1 %v929_v2 }
  0x8d   :  { %609 = vmatmul.mubr.bf16.vlgmr.msra.gmra.mxu0 %v107_v4  ;;  %650 = vmatmul.mubr.bf16.vlgmr.msra.gmra.mxu1 %v107_v4 }
 0x12d   :  { %v368_v5 = vpop.f32.mrf.mxu0  ;;  %v409_v6 = vpop.f32.mrf.mxu1 }
 0x12f   :  { %v370_v7 = vpop.f32.mrf.mxu0  ;;  %v411_v8 = vpop.f32.mrf.mxu1 }
 0x131   :  { %v372_v9 = vpop.f32.mrf.mxu0  ;;  %v413_v10 = vpop.f32.mrf.mxu1 }
 0x133   :  { %v373_v11 = vpop.f32.mrf.mxu0  ;;  %v414_v12 = vpop.f32.mrf.mxu1 }
 0x14d   :  { %v610_v16 = vpop.f32.mrf.mxu0  ;;  %v651_v18 = vpop.f32.mrf.mxu1 }
 0x14e   :  { %v611_v30 = vadd.f32 %v610_v16, %v368_v5  ;;  %v652_v37 = vadd.f32 %v651_v18, %v409_v6 }
 0x14f   :  { %v612_v20 = vpop.f32.mrf.mxu0  ;;  %v653_v21 = vpop.f32.mrf.mxu1 }
 0x150   :  { %v613_v22 = vadd.f32 %v612_v20, %v370_v7  ;;  %v680_v34 = vadd.f32 %v663_v31, %v611_v30  ;;  %v654_v35 = vadd.f32 %v653_v21, %v411_v8  ;;  %v682_v41 = vadd.f32 %v671_v38, %v652_v37 }
 0x151   :  { %v614_v23 = vpop.f32.mrf.mxu0  ;;  %v655_v24 = vpop.f32.mrf.mxu1 }
 0x152   :  { %v681_v25 = vadd.f32 %v667_v19, %v613_v22  ;;  %v684_v39 = vmul.f32 1.442695, %v680_v34  ;;  %v683_v40 = vadd.f32 %v675_v36, %v654_v35 }
 0x153   :  { %v615_v26 = vpop.f32.mrf.mxu0  ;;  %v656_v27 = vpop.f32.mrf.mxu1 }
 0x154   :  { %v822_v29 = vmul.f32 -1.442695, %v681_v25  ;;  %v823_v44 = vmul.f32 -1.442695, %v683_v40 }
 0x156   :  { %932 = vpow2.f32 %v822_v29 }
 0x157   :  { %934 = vpow2.f32 %v684_v39 }
 0x158   :  { %936 = vtanh.f32 %v682_v41 }
 0x163   :  { %v933_v42 = vpop.eup %932 }
 0x164   :  { %v689_v43 = vadd.f32 1.0, %v933_v42  ;;  %v935_v45 = vpop.eup %934 }
 0x165   :  { %v937_v48 = vpop.eup %936 }
 0x166   :  { %938 = vrcp.f32 %v689_v43  ;;  %v704_v52 = vmul.f32 %v937_v48, %v935_v45 }
 0x167   :  { %940 = vpow2.f32 %v823_v44 }
 0x173   :  { %v939_v49 = vpop.eup %938 }
 0x174   :  { %v701_v50 = vmul.f32 %v939_v49, %v700_v46  ;;  %v703_v51 = vmul.f32 %v939_v49, %v699_v47  ;;  %v941_v53 = vpop.eup %940 }
 0x175   :  { %v696_v56 = vadd.f32 1.0, %v941_v53 }
 0x176   :  { %v705_v54 = vadd.f32 %v704_v52, %v703_v51  ;;  %v702_v55 = vadd.f32 %v935_v45, %v701_v50 }
 0x178   :  { %711 = vst [vmem:[#allocation14] sm:$0xff] %v705_v54  ;;  %v706_v57 = vadd.f32 1e-08, %v702_v55  ;;  %712 = vst [vmem:[#allocation16] sm:$0xff] %v702_v55 }
 0x179   :  { %1077 = shalt.err (!%p1074_p6)
}
 0x17a   :  { %732 = dma.vmem_to_hbm [thread:$0]  %s730_s16, 128, %s1242_s8, [#allocation15]   ;;  %942 = vrcp.f32 %v706_v57 }
 0x17b   :  { %s1086_s22 = scalar_lea.vmem %s740_s18, 128  ;;  %p1091_p8 = scmp.lt.s32.totalorder %s740_s18, %s740_s18 }
 0x17c   :  { %p1087_p7 = scmp.ne.s32.totalorder %s740_s18, %s1086_s22  ;;  %p1092_p9 = scmp.lt.s32.totalorder %s1086_s22, %s1086_s22 }
 0x17e   :  { %p1093_p10 = por %p1092_p9, %p1091_p8 }
 0x180   :  { %p1094_p11 = pnand %p1093_p10, %p1087_p7 }
 0x182   :  { %1097 = shalt.err (!%p1094_p11)
}
 0x183   :  { %742 = dma.vmem_to_hbm [thread:$0]  %s740_s18, 128, %s1243_s9, [#allocation15]   ;;  %944 = vrcp.f32 %v696_v56 }
 0x184   :  { %s1149_s24 = smov [#allocation13]  }
 0x185   :  { %s719_s25 = sshll.u32 %s1149_s24, 4  ;;  %s720_s25 = int_to_ptr.vmem [resolvable:$true] %s719_s25 }
 0x186   :  { %s1106_s8 = scalar_lea.vmem %s720_s25, 128  ;;  %p1111_p13 = scmp.lt.s32.totalorder %s720_s25, %s720_s25 }
 0x187   :  { %v943_v58 = vpop.eup %942  ;;  %p1107_p12 = scmp.ne.s32.totalorder %s720_s25, %s1106_s8  ;;  %p1112_p0 = scmp.lt.s32.totalorder %s1106_s8, %s1106_s8 }
 0x188   :  { %v708_v59 = vmul.f32 %v943_v58, %v705_v54 }
 0x189   :  { %p1113_p1 = por %p1112_p0, %p1111_p13 }
 0x18b   :  { %p1114_p2 = pnand %p1113_p1, %p1107_p12 }
 0x190   :  { %v945_v60 = vpop.eup %944 }
 0x191   :  { %v709_v61 = vmul.f32 %v945_v60, %v708_v59 }
 0x193   :  { %710 = vst [vmem:[#allocation13] sm:$0xff] %v709_v61 }
 0x194   :  { %1117 = shalt.err (!%p1114_p2)
}
 0x195   :  { %722 = dma.vmem_to_hbm [thread:$0]  %s720_s25, 128, %s1241_s7, [#allocation4]  }
 0x196   :  { %1134 = dma.done.wait [#allocation4], 128  }
 0x197   :  { %1135 = vsyncadd [#allocation4], 4294967168 }
 0x198   :  { %1136 = dma.done.wait [#allocation15], 256  }
 0x199   :  { %1137 = vsyncadd [#allocation15], 4294967040 }
 0x19a   :  { %752 = vsyncpa [#allocation3], 1 }
 0x19b   :  { %753 = vsyncpa [#allocation6], 1 }
 0x19c   :  { %754 = vsyncpa [#allocation9], 1 }
 0x19d   :  { %755 = vsyncpa [#allocation12], 1 }
 0x19e   :  { %756 = vsyncpa [#allocation4], 1 }
 0x19f   :  { %757 = vsyncpa [#allocation15], 1 }

</bundles_post_ra>
